<compile_context>
chip_gen: v6e
topology: v6e:2x2x1
jax: 0.10.0
libtpu: 0.0.40
codegen_flags: <defaults>
</compile_context>

<pallas_src>
import functools

import jax
import jax.numpy as jnp
from jax.experimental import pallas as pl
from jax.experimental.pallas import tpu as pltpu

LANES = 128
MAX_TILE_ROWS = 2048      # (2048, 128) f32 tile = 1 MiB (bf16: 512 KiB)
ACC_ROWS_MAX = 32         # wide accumulator = 4 vregs -> 4 independent add chains


def _bce_sum_kernel(x_ref, acc_ref, *, target_is_real, rows_total, n_tiles,
                    tiles_per_split, acc_rows):
    """Accumulate sum of BCE(sigmoid(x), const target) over one tile."""
    c = pl.program_id(0)          # split (parallel axis, v7x megacore)
    i = pl.program_id(1)          # tile within split (reduction axis)
    tile_rows = x_ref.shape[0]

    @pl.when(i == 0)
    def _():
        acc_ref[...] = jnp.zeros_like(acc_ref)

    x = x_ref[...].astype(jnp.float32)

    # Stable softplus form of -log(sigmoid(x)) / -log(1-sigmoid(x)); clamp at
    # 100 matches nn.BCELoss's log clamp of -100.  No divide -> 2 EUP ops/elem.
    lp = jnp.log(1.0 + jnp.exp(-jnp.abs(x)))
    lin = jnp.maximum(-x, 0.0) if target_is_real else jnp.maximum(x, 0.0)
    per_elem = jnp.minimum(lin + lp, 100.0)

    def fold(v):
        # (tile_rows,128) -> (tile_rows//acc_rows, acc_rows, 128) is a free
        # sublane regroup; sum(0) gives acc_rows//8 independent vreg add chains.
        return v.reshape(-1, acc_rows, LANES).sum(axis=0)

    if n_tiles * tile_rows == rows_total:
        # All tiles are full: unmasked fast path (no iota / compare / select).
        acc_ref[...] += fold(per_elem)
    else:
        tile_no = c * tiles_per_split + i
        is_last = tile_no == (n_tiles - 1)
        valid_rows_last = rows_total - (n_tiles - 1) * tile_rows  # static int

        @pl.when(jnp.logical_not(is_last))
        def _():
            acc_ref[...] += fold(per_elem)

        @pl.when(is_last)
        def _():
            # Only the single partial last tile pays for the row mask (the
            # padded region of a ragged last block holds unspecified data).
            row = jax.lax.broadcasted_iota(jnp.int32, per_elem.shape, 0)
            acc_ref[...] += fold(jnp.where(row < valid_rows_last, per_elem, 0.0))


def _bce_tail_sum(v, target_is_real):
    """Plain-jnp BCE sum for tiny (<128 element) ragged tails."""
    v = v.astype(jnp.float32)
    lp = jnp.log1p(jnp.exp(-jnp.abs(v)))
    lin = jnp.maximum(-v, 0.0) if target_is_real else jnp.maximum(v, 0.0)
    return jnp.sum(jnp.minimum(lin + lp, 100.0))


def _bce_sum(x, target_is_real: bool):
    """Sum over all elements of BCE(sigmoid(x), constant target)."""
    n = int(x.size)
    flat = x.reshape(-1)                      # native dtype, no upcast copy
    total = jnp.float32(0.0)

    rows = n // LANES
    rem = n % LANES
    if rem:
        # TODO(synk): a fully copy-free ragged path would need manual DMA from a
        # 1-D HBM ref (pl.ANY); here the <128-element tail is summed with plain
        # jnp and the 128-aligned bulk is sliced off.
        total = total + _bce_tail_sum(flat[rows * LANES:], target_is_real)
        if rows == 0:
            return total
        flat = flat[: rows * LANES]

    x2d = flat.reshape(rows, LANES)

    if rows <= MAX_TILE_ROWS:
        tile_rows, n_tiles = rows, 1
    else:
        tile_rows = MAX_TILE_ROWS
        n_tiles = -(-rows // tile_rows)

    # 2-way split of the tile axis only when it divides exactly (v7x megacore);
    # on 1-TC chips this stays 1 so no duplicate tile is ever DMA'd/computed.
    nsplit = 2 if (n_tiles >= 4 and n_tiles % 2 == 0) else 1
    tiles_per_split = n_tiles // nsplit

    if tile_rows % ACC_ROWS_MAX == 0:
        acc_rows = ACC_ROWS_MAX
    elif tile_rows % 8 == 0:
        acc_rows = 8
    else:
        acc_rows = 1                      # tiny single-tile case only

    kernel = functools.partial(
        _bce_sum_kernel,
        target_is_real=bool(target_is_real),
        rows_total=rows,
        n_tiles=n_tiles,
        tiles_per_split=tiles_per_split,
        acc_rows=acc_rows,
    )

    partials = pl.pallas_call(
        kernel,
        out_shape=jax.ShapeDtypeStruct((nsplit * acc_rows, LANES), jnp.float32),
        grid=(nsplit, tiles_per_split),
        in_specs=[
            pl.BlockSpec((tile_rows, LANES),
                         lambda c, i: (c * tiles_per_split + i, 0)),
        ],
        out_specs=pl.BlockSpec((acc_rows, LANES), lambda c, i: (c, 0)),
        compiler_params=pltpu.CompilerParams(
            dimension_semantics=("parallel", "arbitrary")),
    )(x2d)

    # Single cheap cross-lane reduce on the tiny partials.
    return total + jnp.sum(partials)


def patch_adversarial_loss(outPatchD, is_real: bool, for_disc: bool,
                           reduction: str = "mean"):
    """Forward pass of PatchAdversarialLoss (sigmoid + BCE vs constant labels)."""
    if (not for_disc) and (not is_real):
        is_real = True
    outputs = list(outPatchD) if isinstance(outPatchD, (list, tuple)) else [outPatchD]

    # TODO(synk): multi-scale outputs could be fused into one pallas_call via a
    # scalar-prefetch tile->output table; kept one launch per output for clarity.
    per_output = []
    for out in outputs:
        total = _bce_sum(out, is_real)
        if reduction == "mean":
            per_output.append(total * jnp.float32(1.0 / out.size))
        else:  # "sum"
            per_output.append(total)
    stacked = jnp.stack(per_output)
    return jnp.mean(stacked) if reduction == "mean" else jnp.sum(stacked)


if __name__ == "__main__":
    key = jax.random.PRNGKey(0)
    k1, k2, k3, k4, k5 = jax.random.split(key, 5)
    # Raw discriminator patch logits (the module applies sigmoid internally).
    d_small = jax.random.normal(k1, (2, 4, 16, 16), jnp.float32) * 2.0
    d_odd = jax.random.normal(k2, (2, 3, 15, 15), jnp.float32) * 2.0       # ragged tail path
    d_big = jax.random.normal(k3, (2, 4, 192, 192), jnp.float32) * 2.0     # partial last tile
    d_bf16 = (jax.random.normal(k4, (2, 4, 96, 96), jnp.float32) * 2.0
              ).astype(jnp.bfloat16)                                       # native bf16 stream
    d_multi = jax.random.normal(k5, (4, 4, 256, 256), jnp.float32) * 2.0   # 4 tiles -> split

    def ref_loss(x, is_real, for_disc, reduction="mean"):
        if (not for_disc) and (not is_real):
            is_real = True
        t = 1.0 if is_real else 0.0
        xs = x if isinstance(x, (list, tuple)) else [x]
        per = []
        for a in xs:
            p = 1.0 / (1.0 + jnp.exp(-a.astype(jnp.float32)))
            lx = jnp.maximum(jnp.log(p), -100.0)
            l1 = jnp.maximum(jnp.log1p(-p), -100.0)
            e = -(t * lx + (1.0 - t) * l1)
            per.append(jnp.mean(e) if reduction == "mean" else jnp.sum(e))
        s = jnp.stack(per)
        return jnp.mean(s) if reduction == "mean" else jnp.sum(s)

    cases = [
        (d_small, True, True, "mean"),
        (d_small, False, True, "mean"),
        (d_small, False, False, "mean"),   # generator branch flips is_real -> True
        (d_small, True, True, "sum"),
        (d_odd, True, True, "mean"),
        (d_odd, False, True, "mean"),
        (d_big, True, True, "mean"),
        (d_big, False, True, "mean"),
        (d_bf16, False, True, "mean"),
        (d_multi, True, True, "mean"),
        ([d_small, d_odd], False, False, "mean"),   # list-of-scales input
    ]

    results = []
    for x, is_real, for_disc, red in cases:
        got = patch_adversarial_loss(x, is_real, for_disc, reduction=red)
        want = ref_loss(x, is_real, for_disc, reduction=red)
        results.append((got, want))
    jax.block_until_ready(results)

    for got, want in results:
        g, w = float(got), float(want)
        assert abs(g - w) <= 1e-5 + 1e-5 * abs(w), (g, w)

    print("KERNEL_OK")
</pallas_src>

<mosaic_0001>
module attributes {stable_mosaic.version = 11 : i64} {
  func.func @_bce_sum_kernel(%arg0: i32, %arg1: i32, %arg2: memref<16x128xf32, #tpu.memory_space<vmem>>, %arg3: memref<8x128xf32, #tpu.memory_space<vmem>>) attributes {dimension_semantics = [#tpu.dimension_semantics<parallel>, #tpu.dimension_semantics<arbitrary>], iteration_bounds = array<i64: 1, 1>, scalar_prefetch = 0 : i64, scratch_operands = 0 : i64, tpu.core_type = #tpu.core_type<tc>, window_params = [{transform_indices = @transform_0, window_bounds = array<i64: 16, 128>}, {transform_indices = @transform_1, window_bounds = array<i64: 8, 128>}]} {
    %c0_i32 = arith.constant 0 : i32
    %0 = arith.cmpi eq, %arg1, %c0_i32 : i32
    %1 = arith.extui %0 : i1 to i32
    %c0_i32_0 = arith.constant 0 : i32
    %2 = arith.cmpi ne, %1, %c0_i32_0 : i32
    scf.if %2 {
      %cst_11 = arith.constant 0.000000e+00 : f32
      %23 = vector.broadcast %cst_11 : f32 to vector<8x128xf32>
      %c0_12 = arith.constant 0 : index
      %c0_13 = arith.constant 0 : index
      %24 = vector.load %arg3[%c0_12, %c0_13] : memref<8x128xf32, #tpu.memory_space<vmem>>, vector<8x128xf32>
      tpu.vector_store %arg3[%c0_12, %c0_13], %23 {strides = array<i32>} : memref<8x128xf32, #tpu.memory_space<vmem>>, vector<8x128xf32>,
    } else {
    }
    %c0 = arith.constant 0 : index
    %c0_1 = arith.constant 0 : index
    %3 = vector.load %arg2[%c0, %c0_1] : memref<16x128xf32, #tpu.memory_space<vmem>>, vector<16x128xf32>
    %4 = math.absf %3 : vector<16x128xf32>
    %cst = arith.constant 0.000000e+00 : f32
    %5 = vector.broadcast %cst : f32 to vector<16x128xf32>
    %6 = arith.subf %5, %4 : vector<16x128xf32>
    %7 = math.exp %6 : vector<16x128xf32>
    %cst_2 = arith.constant 1.000000e+00 : f32
    %8 = vector.broadcast %cst_2 : f32 to vector<16x128xf32>
    %9 = arith.addf %8, %7 : vector<16x128xf32>
    %10 = math.log %9 : vector<16x128xf32>
    %cst_3 = arith.constant 0.000000e+00 : f32
    %11 = vector.broadcast %cst_3 : f32 to vector<16x128xf32>
    %12 = arith.subf %11, %3 : vector<16x128xf32>
    %cst_4 = arith.constant 0.000000e+00 : f32
    %13 = vector.broadcast %cst_4 : f32 to vector<16x128xf32>
    %14 = arith.maximumf %12, %13 : vector<16x128xf32>
    %15 = arith.addf %14, %10 : vector<16x128xf32>
    %cst_5 = arith.constant 1.000000e+02 : f32
    %16 = vector.broadcast %cst_5 : f32 to vector<16x128xf32>
    %17 = arith.minimumf %15, %16 : vector<16x128xf32>
    %c0_6 = arith.constant 0 : index
    %c0_7 = arith.constant 0 : index
    %18 = vector.load %arg3[%c0_6, %c0_7] : memref<8x128xf32, #tpu.memory_space<vmem>>, vector<8x128xf32>
    %19 = vector.shape_cast %17 : vector<16x128xf32> to vector<2x8x128xf32>
    %cst_8 = arith.constant dense<0.000000e+00> : vector<8x128xf32>
    %20 = vector.multi_reduction <add>, %19, %cst_8 [0] : vector<2x8x128xf32> to vector<8x128xf32>
    %21 = arith.addf %18, %20 : vector<8x128xf32>
    %c0_9 = arith.constant 0 : index
    %c0_10 = arith.constant 0 : index
    %22 = vector.load %arg3[%c0_9, %c0_10] : memref<8x128xf32, #tpu.memory_space<vmem>>, vector<8x128xf32>
    tpu.vector_store %arg3[%c0_9, %c0_10], %21 {strides = array<i32>} : memref<8x128xf32, #tpu.memory_space<vmem>>, vector<8x128xf32>,
    return
  }
  func.func @transform_0(%arg0: i32, %arg1: i32) -> (i32, i32) {
    %c1_i32 = arith.constant 1 : i32
    %0 = arith.muli %arg0, %c1_i32 : i32
    %1 = arith.addi %0, %arg1 : i32
    %c0_i32 = arith.constant 0 : i32
    %c0_i32_0 = arith.constant 0 : i32
    return %1, %c0_i32 : i32, i32
  }
  func.func @transform_1(%arg0: i32, %arg1: i32) -> (i32, i32) {
    %c0_i32 = arith.constant 0 : i32
    %c0_i32_0 = arith.constant 0 : i32
    return %arg0, %c0_i32 : i32, i32
  }
}

</mosaic_0001>

<bundles_post_ra>
// kernel: tpu_custom_call.1
= control target key start
LH: loop header
LB: loop body
LE: loop exit
PB: predicated region body
PF: predicated region fallthrough
CT: control target
= control target key end

     0   :  { %6 = vsyncpa [#allocation3], 0  ;;  %s154_s0 = inlined_call_operand.hbm [shape: f32[16,128], index: 0, kind: input, shape index: {}]   ;;  %s155_s1 = inlined_call_operand.hbm [shape: f32[8,128], index: 1, kind: output, shape index: {}]  }
   0x1   :  { %7 = vsyncpa [#allocation4], 0  ;;  %s134_s6 = smov [#allocation2]  }
   0x2   :  { %s17_s7 = sshll.u32 %s134_s6, 4  ;;  %s18_s7 = int_to_ptr.vmem [resolvable:$true] %s17_s7 }
   0x3   :  { %s98_s8 = scalar_lea.vmem %s18_s7, 256  ;;  %p103_p1 = scmp.lt.s32.totalorder %s18_s7, %s18_s7 }
   0x4   :  { %p99_p0 = scmp.ne.s32.totalorder %s18_s7, %s98_s8  ;;  %p104_p2 = scmp.lt.s32.totalorder %s98_s8, %s98_s8 }
   0x6   :  { %p105_p3 = por %p104_p2, %p103_p1 }
   0x8   :  { %p106_p4 = pnand %p105_p3, %p99_p0 }
   0xa   :  { %109 = shalt.err (!%p106_p4)
}
   0xb   :  { %s135_s9 = smov 128   ;;  %s136_s10 = smov 8  }
   0xc   :  { %23 = dma.hbm_to_vmem [thread:$0]  %s154_s0, 256, %s18_s7, [#allocation3], %s135_s9, %s135_s9, %s136_s10  }
   0xd   :  { %130 = dma.done.wait [#allocation3], 256  }
   0xe   :  { %131 = vsyncadd [#allocation3], 4294967040  ;;  %v34_v0 = vld [vmem:[#allocation2] sm:$0xff]  ;;  %v35_v1 = vld [vmem:[#allocation2 + $0x8] sm:$0xff]  ;;  %s137_s0 = smov [#allocation5]  }
   0xf   :  { %v36_v2 = vand.u32 2147483647, %v34_v0  ;;  %v37_v3 = vand.u32 2147483647, %v35_v1  ;;  %v50_v12 = vsub.f32 0.0, %v34_v0  ;;  %v51_v13 = vsub.f32 0.0, %v35_v1 }
  0x10   :  { %s68_s13 = sshll.u32 %s137_s0, 4  ;;  %s69_s13 = int_to_ptr.vmem [resolvable:$true] %s68_s13 }
  0x11   :  { %v38_v4 = vsub.f32 0.0, %v36_v2  ;;  %v39_v5 = vsub.f32 0.0, %v37_v3  ;;  %v52_v14 = vmax.f32 %v50_v12, 0.0  ;;  %v53_v16 = vmax.f32 %v51_v13, 0.0  ;;  %s110_s14 = scalar_lea.vmem %s69_s13, 128  ;;  %p115_p6 = scmp.lt.s32.totalorder %s69_s13, %s69_s13 }
  0x12   :  { %p111_p5 = scmp.ne.s32.totalorder %s69_s13, %s110_s14  ;;  %p116_p7 = scmp.lt.s32.totalorder %s110_s14, %s110_s14 }
  0x13   :  { %v40_v6 = vmul.f32 1.442695, %v38_v4  ;;  %v42_v7 = vmul.f32 1.442695, %v39_v5 }
  0x14   :  { %p117_p8 = por %p116_p7, %p115_p6 }
  0x15   :  { %82 = vpow2.f32 %v40_v6 }
  0x16   :  { %84 = vpow2.f32 %v42_v7  ;;  %p118_p9 = pnand %p117_p8, %p111_p5 }
  0x22   :  { %v83_v8 = vpop.eup %82 }
  0x23   :  { %v85_v9 = vpop.eup %84  ;;  %v44_v10 = vadd.f32 1.0, %v83_v8 }
  0x24   :  { %v45_v11 = vadd.f32 1.0, %v85_v9 }
  0x25   :  { %86 = vlog2.f32 %v44_v10 }
  0x26   :  { %88 = vlog2.f32 %v45_v11 }
  0x32   :  { %v87_v15 = vpop.eup %86 }
  0x33   :  { %v89_v17 = vpop.eup %88  ;;  %v47_v18 = vmul.f32 0.6931472, %v87_v15 }
  0x34   :  { %v49_v19 = vmul.f32 0.6931472, %v89_v17 }
  0x35   :  { %v54_v20 = vadd.f32 %v52_v14, %v47_v18 }
  0x36   :  { %v55_v21 = vadd.f32 %v53_v16, %v49_v19 }
  0x37   :  { %v56_v22 = vmin.f32 %v54_v20, 100.0 }
  0x38   :  { %v57_v23 = vmin.f32 %v55_v21, 100.0 }
  0x3a   :  { %v59_v24 = vadd.f32 %v57_v23, %v56_v22 }
  0x3c   :  { %61 = vst [vmem:[#allocation5] sm:$0xff] %v59_v24 }
  0x3d   :  { %121 = shalt.err (!%p118_p9)
}
  0x3e   :  { %71 = dma.vmem_to_hbm [thread:$0]  %s69_s13, 128, %s155_s1, [#allocation4]  }
  0x3f   :  { %132 = dma.done.wait [#allocation4], 128  }
  0x40   :  { %133 = vsyncadd [#allocation4], 4294967168 }
  0x41   :  { %75 = vsyncpa [#allocation3], 1 }
  0x42   :  { %76 = vsyncpa [#allocation4], 1 }

</bundles_post_ra>
